<compile_context>
chip_gen: v7x
topology: tpu7x:2x2x1
jax: 0.10.0
libtpu: 0.0.40
codegen_flags: <defaults>
</compile_context>

<pallas_src>
import functools

import jax
import jax.numpy as jnp
from jax.experimental import pallas as pl
from jax.experimental.pallas import tpu as pltpu


_LANE = 128
_TILE_TARGET_BYTES = 2 * 1024 * 1024   # per-tile target (past the DMA-overhead knee)
_MAX_ELEM_BYTES = 6 * 1024 * 1024      # guard: one matrix must fit a VMEM tile


def _ceil_div(a, b):
    return -(-a // b)


def _sinkhorn_kernel(s_ref, out_ref, *, max_iter, inv_tau, col_axis, row_axis):
    """Shared body.  The wrapper chooses the tile layout; `col_axis`/`row_axis`
    are the in-tile axes corresponding to the matrix column / row axes."""
    log_s = s_ref[...].astype(jnp.float32) * inv_tau   # * (1/tau): vmul, not divide

    if max_iter <= 0:
        out_ref[...] = jnp.exp(log_s).astype(out_ref.dtype)
        return

    # max_iter is small and static -> fully unrolled python loop.
    for i in range(max_iter):
        axis = col_axis if i % 2 == 0 else row_axis
        m = jnp.max(log_s, axis=axis, keepdims=True)
        shifted = log_s - m
        p = jnp.exp(shifted)
        ssum = jnp.sum(p, axis=axis, keepdims=True)
        if i == max_iter - 1:
            # Reuse p from the last iteration instead of a final full-tile
            # exp(log_s) pass: exp(log_s - m - log(sum)) == p * (1/sum).
            # (pl.reciprocal(..., approx=True) is available at ~1e-3 rel err;
            #  exact reciprocal is used here to match the reference tightly —
            #  it only acts on the reduced vector, so the cost is negligible.)
            inv = pl.reciprocal(ssum, approx=False)
            out_ref[...] = (p * inv).astype(out_ref.dtype)
        else:
            log_s = shifted - jnp.log(ssum)


def _pick_batch_block(B, N, M):
    per_elem = N * M * 4
    bt = max(1, min(B, _TILE_TARGET_BYTES // max(per_elem, 1)))
    if bt >= B and B >= 2:
        # Keep >= 2 grid steps so the "parallel" batch axis can be split
        # across v7x's two TensorCores (harmless on 1-TC chips).
        bt = _ceil_div(B, 2)
    return bt


def _lane_layout_profitable(B, N, M):
    """Compare total vregs of full-tile work between the two layouts."""
    if M % _LANE == 0:
        return False                                   # already lane-dense
    if N * M * _LANE * 4 > _TILE_TARGET_BYTES:
        return False                                   # one 128-lane block too big
    std_vregs = B * _ceil_div(N, 8) * _ceil_div(M, _LANE)
    lane_vregs = _ceil_div(B, _LANE) * N * _ceil_div(M, 8)
    return lane_vregs < std_vregs


def _run_standard(s, max_iter, tau):
    B, N, M = s.shape
    bt = _pick_batch_block(B, N, M)
    kernel = functools.partial(
        _sinkhorn_kernel, max_iter=max_iter, inv_tau=float(1.0 / tau),
        col_axis=2, row_axis=1)
    return pl.pallas_call(
        kernel,
        out_shape=jax.ShapeDtypeStruct((B, N, M), s.dtype),
        grid=(_ceil_div(B, bt),),
        in_specs=[pl.BlockSpec((bt, N, M), lambda b: (b, 0, 0))],
        out_specs=pl.BlockSpec((bt, N, M), lambda b: (b, 0, 0)),
        compiler_params=pltpu.CompilerParams(dimension_semantics=("parallel",)),
    )(s)


def _run_lane(s, max_iter, tau):
    """Lane-dense layout: batch on the lane axis, (N, M, B_pad)."""
    B, N, M = s.shape
    n_groups = _ceil_div(B, _LANE)
    per_group = N * M * _LANE * 4
    g = max(1, min(n_groups, _TILE_TARGET_BYTES // max(per_group, 1)))
    if g >= n_groups and n_groups >= 2:
        g = _ceil_div(n_groups, 2)      # keep >= 2 grid steps (v7x megacore)
    lb = g * _LANE
    b_pad = _ceil_div(B, lb) * lb

    # Layout plumbing only (not compute): batch -> padded lane axis.
    s_t = jnp.transpose(s, (1, 2, 0))
    if b_pad != B:
        # Zero padding keeps padded lanes finite (no NaN); sliced off below.
        s_t = jnp.pad(s_t, ((0, 0), (0, 0), (0, b_pad - B)))

    kernel = functools.partial(
        _sinkhorn_kernel, max_iter=max_iter, inv_tau=float(1.0 / tau),
        col_axis=1, row_axis=0)
    out_t = pl.pallas_call(
        kernel,
        out_shape=jax.ShapeDtypeStruct((N, M, b_pad), s.dtype),
        grid=(b_pad // lb,),
        in_specs=[pl.BlockSpec((N, M, lb), lambda b: (0, 0, b))],
        out_specs=pl.BlockSpec((N, M, lb), lambda b: (0, 0, b)),
        compiler_params=pltpu.CompilerParams(dimension_semantics=("parallel",)),
    )(s_t)
    return jnp.transpose(out_t[:, :, :B], (2, 0, 1))


def sinkhorn_forward_log(s, *, max_iter: int = 10, tau: float = 0.05):
    """JAX/Pallas equivalent of Sinkhorn.forward_log with default options.

    Accepts (N, M) or (B, N, M); mirrors the module's internal transpose when
    the input has more rows than columns.
    """
    matrix_input = s.ndim == 2
    if matrix_input:
        s = s[None]
    if s.ndim != 3:
        raise ValueError("input data shape not understood.")

    transposed = s.shape[2] < s.shape[1]
    if transposed:
        s = jnp.swapaxes(s, 1, 2)

    B, N, M = s.shape
    if N * M * 4 > _MAX_ELEM_BYTES:
        # TODO(synk): tiled / online-logsumexp path for matrices that do not
        # fit a single VMEM tile.
        raise NotImplementedError("single Sinkhorn matrix too large for one VMEM tile")

    if _lane_layout_profitable(B, N, M):
        out = _run_lane(s, max_iter, tau)
    else:
        out = _run_standard(s, max_iter, tau)

    if transposed:
        out = jnp.swapaxes(out, 1, 2)
    if matrix_input:
        out = out[0]
    return out


def _sinkhorn_reference(s, max_iter=10, tau=0.05):
    """Pure-JAX reference mirroring the PyTorch forward_log (full slices)."""
    matrix_input = s.ndim == 2
    if matrix_input:
        s = s[None]
    transposed = s.shape[2] < s.shape[1]
    if transposed:
        s = jnp.swapaxes(s, 1, 2)
    log_s = s.astype(jnp.float32) / tau
    for i in range(max_iter):
        axis = -1 if i % 2 == 0 else -2
        log_s = log_s - jax.scipy.special.logsumexp(log_s, axis=axis, keepdims=True)
    out = jnp.exp(log_s)
    if transposed:
        out = jnp.swapaxes(out, 1, 2)
    if matrix_input:
        out = out[0]
    return out


# TODO(synk): per-batch variable nrows/ncols and dummy_row padding (the PyTorch
# per-b python loop with data-dependent slices) are not implemented; only the
# default full-slice forward_log path is.

if __name__ == "__main__":
    key = jax.random.PRNGKey(0)
    k1, k2, k3 = jax.random.split(key, 3)

    # 1) Small batched input -> standard batch-blocked path (grid of 2 steps).
    s1 = jax.random.normal(k1, (4, 8, 16), dtype=jnp.float32)
    o1 = jax.block_until_ready(sinkhorn_forward_log(s1, max_iter=10, tau=0.05))
    r1 = _sinkhorn_reference(s1, max_iter=10, tau=0.05)
    assert o1.shape == s1.shape
    assert jnp.allclose(o1, r1, atol=1e-5, rtol=1e-4), "mismatch (standard path)"

    # 2) Larger batch of small matrices -> lane-dense path (batch on lanes).
    s2 = jax.random.normal(k2, (256, 8, 16), dtype=jnp.float32)
    o2 = jax.block_until_ready(sinkhorn_forward_log(s2, max_iter=10, tau=0.05))
    r2 = _sinkhorn_reference(s2, max_iter=10, tau=0.05)
    assert jnp.allclose(o2, r2, atol=1e-5, rtol=1e-4), "mismatch (lane-dense path)"

    # 3) Single 2-D matrix with more rows than columns -> transpose path.
    s3 = jax.random.normal(k3, (16, 8), dtype=jnp.float32)
    o3 = jax.block_until_ready(sinkhorn_forward_log(s3, max_iter=10, tau=0.05))
    r3 = _sinkhorn_reference(s3, max_iter=10, tau=0.05)
    assert o3.shape == (16, 8)
    assert jnp.allclose(o3, r3, atol=1e-5, rtol=1e-4), "mismatch (2-D transpose path)"

    print("KERNEL_OK")
</pallas_src>

<mosaic_0001>
module attributes {stable_mosaic.version = 11 : i64} {
  func.func @_sinkhorn_kernel(%arg0: i32, %arg1: memref<2x8x16xf32, #tpu.memory_space<vmem>>, %arg2: memref<2x8x16xf32, #tpu.memory_space<vmem>>) attributes {dimension_semantics = [#tpu.dimension_semantics<parallel>], iteration_bounds = array<i64: 2>, scalar_prefetch = 0 : i64, scratch_operands = 0 : i64, tpu.core_type = #tpu.core_type<tc>, window_params = [{transform_indices = @transform_0, window_bounds = array<i64: 2, 8, 16>}, {transform_indices = @transform_1, window_bounds = array<i64: 2, 8, 16>}]} {
    %c0 = arith.constant 0 : index
    %c0_0 = arith.constant 0 : index
    %c0_1 = arith.constant 0 : index
    %0 = vector.load %arg1[%c0, %c0_0, %c0_1] : memref<2x8x16xf32, #tpu.memory_space<vmem>>, vector<2x8x16xf32>
    %cst = arith.constant 2.000000e+01 : f32
    %1 = vector.broadcast %cst : f32 to vector<2x8x16xf32>
    %2 = arith.mulf %0, %1 : vector<2x8x16xf32>
    %cst_2 = arith.constant dense<0xFF800000> : vector<2x8xf32>
    %3 = vector.multi_reduction <maximumf>, %2, %cst_2 [2] : vector<2x8x16xf32> to vector<2x8xf32>
    %4 = vector.shape_cast %3 : vector<2x8xf32> to vector<2x8x1xf32>
    %5 = vector.broadcast %4 : vector<2x8x1xf32> to vector<2x8x16xf32>
    %6 = arith.subf %2, %5 : vector<2x8x16xf32>
    %7 = math.exp %6 : vector<2x8x16xf32>
    %cst_3 = arith.constant dense<0.000000e+00> : vector<2x8xf32>
    %8 = vector.multi_reduction <add>, %7, %cst_3 [2] : vector<2x8x16xf32> to vector<2x8xf32>
    %9 = vector.shape_cast %8 : vector<2x8xf32> to vector<2x8x1xf32>
    %10 = math.log %9 : vector<2x8x1xf32>
    %11 = vector.broadcast %10 : vector<2x8x1xf32> to vector<2x8x16xf32>
    %12 = arith.subf %6, %11 : vector<2x8x16xf32>
    %cst_4 = arith.constant dense<0xFF800000> : vector<2x16xf32>
    %13 = vector.multi_reduction <maximumf>, %12, %cst_4 [1] : vector<2x8x16xf32> to vector<2x16xf32>
    %14 = vector.shape_cast %13 : vector<2x16xf32> to vector<2x1x16xf32>
    %15 = vector.broadcast %14 : vector<2x1x16xf32> to vector<2x8x16xf32>
    %16 = arith.subf %12, %15 : vector<2x8x16xf32>
    %17 = math.exp %16 : vector<2x8x16xf32>
    %cst_5 = arith.constant dense<0.000000e+00> : vector<2x16xf32>
    %18 = vector.multi_reduction <add>, %17, %cst_5 [1] : vector<2x8x16xf32> to vector<2x16xf32>
    %19 = vector.shape_cast %18 : vector<2x16xf32> to vector<2x1x16xf32>
    %20 = math.log %19 : vector<2x1x16xf32>
    %21 = vector.broadcast %20 : vector<2x1x16xf32> to vector<2x8x16xf32>
    %22 = arith.subf %16, %21 : vector<2x8x16xf32>
    %cst_6 = arith.constant dense<0xFF800000> : vector<2x8xf32>
    %23 = vector.multi_reduction <maximumf>, %22, %cst_6 [2] : vector<2x8x16xf32> to vector<2x8xf32>
    %24 = vector.shape_cast %23 : vector<2x8xf32> to vector<2x8x1xf32>
    %25 = vector.broadcast %24 : vector<2x8x1xf32> to vector<2x8x16xf32>
    %26 = arith.subf %22, %25 : vector<2x8x16xf32>
    %27 = math.exp %26 : vector<2x8x16xf32>
    %cst_7 = arith.constant dense<0.000000e+00> : vector<2x8xf32>
    %28 = vector.multi_reduction <add>, %27, %cst_7 [2] : vector<2x8x16xf32> to vector<2x8xf32>
    %29 = vector.shape_cast %28 : vector<2x8xf32> to vector<2x8x1xf32>
    %30 = math.log %29 : vector<2x8x1xf32>
    %31 = vector.broadcast %30 : vector<2x8x1xf32> to vector<2x8x16xf32>
    %32 = arith.subf %26, %31 : vector<2x8x16xf32>
    %cst_8 = arith.constant dense<0xFF800000> : vector<2x16xf32>
    %33 = vector.multi_reduction <maximumf>, %32, %cst_8 [1] : vector<2x8x16xf32> to vector<2x16xf32>
    %34 = vector.shape_cast %33 : vector<2x16xf32> to vector<2x1x16xf32>
    %35 = vector.broadcast %34 : vector<2x1x16xf32> to vector<2x8x16xf32>
    %36 = arith.subf %32, %35 : vector<2x8x16xf32>
    %37 = math.exp %36 : vector<2x8x16xf32>
    %cst_9 = arith.constant dense<0.000000e+00> : vector<2x16xf32>
    %38 = vector.multi_reduction <add>, %37, %cst_9 [1] : vector<2x8x16xf32> to vector<2x16xf32>
    %39 = vector.shape_cast %38 : vector<2x16xf32> to vector<2x1x16xf32>
    %40 = math.log %39 : vector<2x1x16xf32>
    %41 = vector.broadcast %40 : vector<2x1x16xf32> to vector<2x8x16xf32>
    %42 = arith.subf %36, %41 : vector<2x8x16xf32>
    %cst_10 = arith.constant dense<0xFF800000> : vector<2x8xf32>
    %43 = vector.multi_reduction <maximumf>, %42, %cst_10 [2] : vector<2x8x16xf32> to vector<2x8xf32>
    %44 = vector.shape_cast %43 : vector<2x8xf32> to vector<2x8x1xf32>
    %45 = vector.broadcast %44 : vector<2x8x1xf32> to vector<2x8x16xf32>
    %46 = arith.subf %42, %45 : vector<2x8x16xf32>
    %47 = math.exp %46 : vector<2x8x16xf32>
    %cst_11 = arith.constant dense<0.000000e+00> : vector<2x8xf32>
    %48 = vector.multi_reduction <add>, %47, %cst_11 [2] : vector<2x8x16xf32> to vector<2x8xf32>
    %49 = vector.shape_cast %48 : vector<2x8xf32> to vector<2x8x1xf32>
    %50 = math.log %49 : vector<2x8x1xf32>
    %51 = vector.broadcast %50 : vector<2x8x1xf32> to vector<2x8x16xf32>
    %52 = arith.subf %46, %51 : vector<2x8x16xf32>
    %cst_12 = arith.constant dense<0xFF800000> : vector<2x16xf32>
    %53 = vector.multi_reduction <maximumf>, %52, %cst_12 [1] : vector<2x8x16xf32> to vector<2x16xf32>
    %54 = vector.shape_cast %53 : vector<2x16xf32> to vector<2x1x16xf32>
    %55 = vector.broadcast %54 : vector<2x1x16xf32> to vector<2x8x16xf32>
    %56 = arith.subf %52, %55 : vector<2x8x16xf32>
    %57 = math.exp %56 : vector<2x8x16xf32>
    %cst_13 = arith.constant dense<0.000000e+00> : vector<2x16xf32>
    %58 = vector.multi_reduction <add>, %57, %cst_13 [1] : vector<2x8x16xf32> to vector<2x16xf32>
    %59 = vector.shape_cast %58 : vector<2x16xf32> to vector<2x1x16xf32>
    %60 = math.log %59 : vector<2x1x16xf32>
    %61 = vector.broadcast %60 : vector<2x1x16xf32> to vector<2x8x16xf32>
    %62 = arith.subf %56, %61 : vector<2x8x16xf32>
    %cst_14 = arith.constant dense<0xFF800000> : vector<2x8xf32>
    %63 = vector.multi_reduction <maximumf>, %62, %cst_14 [2] : vector<2x8x16xf32> to vector<2x8xf32>
    %64 = vector.shape_cast %63 : vector<2x8xf32> to vector<2x8x1xf32>
    %65 = vector.broadcast %64 : vector<2x8x1xf32> to vector<2x8x16xf32>
    %66 = arith.subf %62, %65 : vector<2x8x16xf32>
    %67 = math.exp %66 : vector<2x8x16xf32>
    %cst_15 = arith.constant dense<0.000000e+00> : vector<2x8xf32>
    %68 = vector.multi_reduction <add>, %67, %cst_15 [2] : vector<2x8x16xf32> to vector<2x8xf32>
    %69 = vector.shape_cast %68 : vector<2x8xf32> to vector<2x8x1xf32>
    %70 = math.log %69 : vector<2x8x1xf32>
    %71 = vector.broadcast %70 : vector<2x8x1xf32> to vector<2x8x16xf32>
    %72 = arith.subf %66, %71 : vector<2x8x16xf32>
    %cst_16 = arith.constant dense<0xFF800000> : vector<2x16xf32>
    %73 = vector.multi_reduction <maximumf>, %72, %cst_16 [1] : vector<2x8x16xf32> to vector<2x16xf32>
    %74 = vector.shape_cast %73 : vector<2x16xf32> to vector<2x1x16xf32>
    %75 = vector.broadcast %74 : vector<2x1x16xf32> to vector<2x8x16xf32>
    %76 = arith.subf %72, %75 : vector<2x8x16xf32>
    %77 = math.exp %76 : vector<2x8x16xf32>
    %cst_17 = arith.constant dense<0.000000e+00> : vector<2x16xf32>
    %78 = vector.multi_reduction <add>, %77, %cst_17 [1] : vector<2x8x16xf32> to vector<2x16xf32>
    %79 = vector.shape_cast %78 : vector<2x16xf32> to vector<2x1x16xf32>
    %80 = math.log %79 : vector<2x1x16xf32>
    %81 = vector.broadcast %80 : vector<2x1x16xf32> to vector<2x8x16xf32>
    %82 = arith.subf %76, %81 : vector<2x8x16xf32>
    %cst_18 = arith.constant dense<0xFF800000> : vector<2x8xf32>
    %83 = vector.multi_reduction <maximumf>, %82, %cst_18 [2] : vector<2x8x16xf32> to vector<2x8xf32>
    %84 = vector.shape_cast %83 : vector<2x8xf32> to vector<2x8x1xf32>
    %85 = vector.broadcast %84 : vector<2x8x1xf32> to vector<2x8x16xf32>
    %86 = arith.subf %82, %85 : vector<2x8x16xf32>
    %87 = math.exp %86 : vector<2x8x16xf32>
    %cst_19 = arith.constant dense<0.000000e+00> : vector<2x8xf32>
    %88 = vector.multi_reduction <add>, %87, %cst_19 [2] : vector<2x8x16xf32> to vector<2x8xf32>
    %89 = vector.shape_cast %88 : vector<2x8xf32> to vector<2x8x1xf32>
    %90 = math.log %89 : vector<2x8x1xf32>
    %91 = vector.broadcast %90 : vector<2x8x1xf32> to vector<2x8x16xf32>
    %92 = arith.subf %86, %91 : vector<2x8x16xf32>
    %cst_20 = arith.constant dense<0xFF800000> : vector<2x16xf32>
    %93 = vector.multi_reduction <maximumf>, %92, %cst_20 [1] : vector<2x8x16xf32> to vector<2x16xf32>
    %94 = vector.shape_cast %93 : vector<2x16xf32> to vector<2x1x16xf32>
    %95 = vector.broadcast %94 : vector<2x1x16xf32> to vector<2x8x16xf32>
    %96 = arith.subf %92, %95 : vector<2x8x16xf32>
    %97 = math.exp %96 : vector<2x8x16xf32>
    %cst_21 = arith.constant dense<0.000000e+00> : vector<2x16xf32>
    %98 = vector.multi_reduction <add>, %97, %cst_21 [1] : vector<2x8x16xf32> to vector<2x16xf32>
    %99 = vector.shape_cast %98 : vector<2x16xf32> to vector<2x1x16xf32>
    %100 = tpu.reciprocal %99 : vector<2x1x16xf32> -> vector<2x1x16xf32>
    %101 = vector.broadcast %100 : vector<2x1x16xf32> to vector<2x8x16xf32>
    %102 = arith.mulf %97, %101 : vector<2x8x16xf32>
    %c0_22 = arith.constant 0 : index
    %c0_23 = arith.constant 0 : index
    %c0_24 = arith.constant 0 : index
    %103 = vector.load %arg2[%c0_22, %c0_23, %c0_24] : memref<2x8x16xf32, #tpu.memory_space<vmem>>, vector<2x8x16xf32>
    tpu.vector_store %arg2[%c0_22, %c0_23, %c0_24], %102 {strides = array<i32>} : memref<2x8x16xf32, #tpu.memory_space<vmem>>, vector<2x8x16xf32>,
    return
  }
  func.func @transform_0(%arg0: i32) -> (i32, i32, i32) {
    %c0_i32 = arith.constant 0 : i32
    %c0_i32_0 = arith.constant 0 : i32
    %c0_i32_1 = arith.constant 0 : i32
    return %arg0, %c0_i32, %c0_i32_0 : i32, i32, i32
  }
  func.func @transform_1(%arg0: i32) -> (i32, i32, i32) {
    %c0_i32 = arith.constant 0 : i32
    %c0_i32_0 = arith.constant 0 : i32
    %c0_i32_1 = arith.constant 0 : i32
    return %arg0, %c0_i32, %c0_i32_0 : i32, i32, i32
  }
}

</mosaic_0001>

<bundles_post_ra>
// kernel: tpu_custom_call.1
= control target key start
LH: loop header
LB: loop body
LE: loop exit
PB: predicated region body
PF: predicated region fallthrough
CT: control target
= control target key end

     0   :  { %6 = vsyncpa [#allocation3], 0  ;;  %s1017_s0 = inlined_call_operand.hbm [shape: f32[4,8,16], index: 0, kind: input, shape index: {}]   ;;  %s1018_s1 = inlined_call_operand.hbm [shape: f32[4,8,16], index: 1, kind: output, shape index: {}]  }
   0x1   :  { %8 = vsyncpa [#allocation3 + $0x1], 0 }
   0x2   :  { %9 = vsyncpa [#allocation4], 0 }
   0x3   :  { %11 = vsyncpa [#allocation4 + $0x1], 0  ;;  %s809_s6 = smov 0   ;;  %s811_s7 = smov 0  }
   0x4   :  { %s813_s8 = smov 0   ;;  %s815_s9 = smov 0  }
   0x5 LB: > { %s830_s10 = sadd.s32 4294967295, %s791_s9   ;;  %s549_s11 = sadd.s32 4294967294, %s791_s9   ;;  %s791_s9 = sphi %s815_s9, %s1031_s9   ;;  %s787_s8 = sphi %s813_s8, %s1030_s8   ;;  %s783_s7 = sphi %s811_s7, %s1029_s7   ;;  %s779_s6 = sphi %s809_s6, %s1028_s6  }
   0x6   : > { %s834_s12 = sadd.s32 1, %s791_s9   ;;  %s24_s13 = sadd.s32 1, %s787_s8 }
   0x7   : > { %s21_s14 = ssub.s32 %s791_s9, %s834_s12  ;;  %p31_p0 = scmp.ne.s32.totalorder %s787_s8, %s783_s7 }
   0x8   : > { %p22_p1 = scmp.eq.s32.totalorder %s21_s14, 0  ;;  %p32_p2 = scmp.eq.s32.totalorder %s791_s9, 0 }
   0x9   : > { %p37_p3 = scmp.ne.s32.totalorder %s783_s7, %s779_s6  ;;  %p38_p4 = scmp.eq.s32.totalorder %s830_s10, 0 }
   0xa   : > { %s846_s15 = scalar_select %p22_p1, %s787_s8, %s24_s13  }
   0xb   : > { %p848_p5 = por %p32_p2, %p31_p0  ;;  %p852_p6 = por %p38_p4, %p37_p3 }
   0xc   : > { %p61_p7 = scmp.eq.s32.totalorder %s830_s10, 1  ;;  %p67_p8 = scmp.eq.s32.totalorder %s549_s11, 1 }
   0xd   : > { %p577_p10 = scmp.lt.s32.totalorder %s791_s9, 2  ;;  %s87_s20 = sand.u32 1, %s787_s8  }
   0xe   : > { %p859_p11 = por %p61_p7, %p31_p0  ;;  %p863_p12 = por %p67_p8, %p37_p3 }
   0xf   : > { %s563_s21 = sshll.u32 %s791_s9, 8  ;;  %s552_s22 = sshll.u32 %s87_s20, 4 }
  0x10   : > { %s1022_s18 = scalar_select %p859_p11, 1, 0 }
  0x11   : > { %s1023_s19 = scalar_select %p863_p12, 1, 0 }
  0x12   : > { %s872_s25 = scalar_lea.hbm %s1017_s0, %s563_s21  ;;  %s91_s26 = scalar_lea.vmem [#allocation2], %s552_s22 }
  0x13   : > { %s98_s27 = sshll.u32 %s91_s26, 4  ;;  %p876_p13 = pnand %p577_p10, %p848_p5  ;;  %s880_s27 = int_to_ptr.vmem [resolvable:$true] %s98_s27 }
  0x14   : > { %s882_s29 = scalar_lea.sflag [#allocation3], %s87_s20  ;;  %s695_s30 = scalar_lea.hbm %s872_s25, 256 }
  0x15   : > { %p696_p0 = scmp.ne.s32.totalorder %s872_s25, %s695_s30  ;;  %p697_p1 = pneg %p876_p13 }
  0x16   : > { %s700_s4 = scalar_lea.hbm %s1017_s0, 512  ;;  %p701_p4 = scmp.lt.u32.totalorder %s872_s25, %s1017_s0 }
  0x17   : > { %p698_p2 = pnand %p697_p1, %p696_p0  ;;  %p702_p5 = scmp.lt.u32.totalorder %s700_s4, %s695_s30 }
  0x18   : > { %p704_p8 = scmp.lt.u32.totalorder %s695_s30, %s872_s25 }
  0x19   : > { %p699_p3 = pneg %p698_p2  ;;  %p703_p7 = por %p702_p5, %p701_p4 }
  0x1b   : > { %p705_p10 = por %p704_p8, %p703_p7 }
  0x1d   : > { %p706_p9 = pnand %p705_p10, %p699_p3 }
  0x1f   : > { %709 = shalt.err (!%p706_p9)
}
  0x20   : > { %s710_s13 = scalar_lea.vmem %s880_s27, 256  ;;  %s793_s14 = smov [#allocation2]  }
  0x21   : > { %p711_p0 = scmp.ne.s32.totalorder %s880_s27, %s710_s13  ;;  %s715_s16 = sshll.u32 %s793_s14, 4  ;;  %s716_s16 = int_to_ptr.vmem [resolvable:$false] %s715_s16 }
  0x22   : > { %s717_s20 = scalar_lea.vmem %s716_s16, 512  ;;  %p718_p11 = scmp.lt.s32.totalorder %s880_s27, %s716_s16 }
  0x23   : > { %p713_p2 = pnand %p711_p0, %p697_p1  ;;  %p719_p4 = scmp.lt.s32.totalorder %s717_s20, %s710_s13 }
  0x25   : > { %p714_p12 = pneg %p713_p2  ;;  %p720_p5 = por %p719_p4, %p718_p11 }
  0x27   : > { %p721_p7 = pnand %p720_p5, %p714_p12 }
  0x29   : > { %724 = shalt.err (!%p721_p7)
}
  0x2a   : > { %s794_s21 = smov 128   ;;  %s795_s22 = smov 8  }
  0x2b   : > { %572 = dma.hbm_to_vmem [thread:$0]  (!%p876_p13), %s872_s25, 256, %s880_s27, %s882_s29, %s794_s21, %s794_s21, %s795_s22  }
  0x2c   : > { %p555_p9 = scmp.ge.s32.totalorder %s791_s9, 1  ;;  %p106_p1 = scmp.lt.s32.totalorder %s791_s9, 3 }
  0x2e   : > { %p107_p3 = pnand %p555_p9, %p106_p1 }
  0x2f   : > { %s913_s23 = sand.u32 (!%p107_p3), 1, %s783_s7  }
  0x30   : > { %110 = sbr.rel (%p107_p3) target bundleno = 1936 (0x790), region = 24  ;;  %s556_s24 = sshll.u32 (!%p107_p3), %s913_s23, 4 }
  0x31   : > { %s113_s26 = scalar_lea.sflag (!%p107_p3), [#allocation3], %s913_s23  ;;  %s116_s30 = scalar_lea.vmem (!%p107_p3), [#allocation2], %s556_s24 }
  0x37   : > { %770 = dma.done.wait (%p852_p6), %s113_s26, 256  }
  0x38   : > { %772 = vsyncadd (%p852_p6), %s113_s26, 4294967040  ;;  %v137_v0 = vld [vmem:[%s116_s30] sm:$0xff]  ;;  %vm141_vm0 = vcmask 130048   ;;  %v138_v1 = vld [vmem:[%s116_s30 + $0x8] sm:$0xff]  ;;  %s564_s17 = sshll.u32 %s830_s10, 8  ;;  %s134_s25 = scalar_lea.vmem [#allocation5], %s556_s24 }
  0x39   : > { %v139_v2 = vmul.f32 20.0, %v137_v0  ;;  %v140_v3 = vmul.f32 20.0, %v138_v1  ;;  %s476_s27 = sshll.u32 %s134_s25, 4  ;;  %s970_s2 = scalar_lea.hbm %s1018_s1, %s564_s17  ;;  %s972_s27 = int_to_ptr.vmem [resolvable:$true] %s476_s27 }
  0x3a   : > { %s463_s10 = scalar_lea.sflag [#allocation4], %s913_s23  ;;  %s725_s3 = scalar_lea.vmem %s972_s27, 256 }
  0x3b   : > { %v142_v4 = vsel %vm141_vm0, %v139_v2, -inf  ;;  %v145_v5 = vsel %vm141_vm0, %v140_v3, -inf  ;;  %p726_p6 = scmp.ne.s32.totalorder %s972_s27, %s725_s3  ;;  %p1025_p11 = scmp.ne.s32.totalorder %s1022_s18, 0 }
  0x3c   : > { %143 = vmax.xlane.f32.xlu0 %v142_v4  ;;  %s796_s4 = smov [#allocation5]  }
  0x3d   : > { %p727_p12 = pnand %p726_p6, %p1025_p11  ;;  %s729_s5 = sshll.u32 %s796_s4, 4  ;;  %s730_s5 = int_to_ptr.vmem [resolvable:$false] %s729_s5 }
  0x3e   : > { %s731_s11 = scalar_lea.vmem %s730_s5, 512  ;;  %p732_p8 = scmp.lt.s32.totalorder %s972_s27, %s730_s5 }
  0x3f   : > { %p728_p13 = pneg %p727_p12  ;;  %p733_p10 = scmp.lt.s32.totalorder %s731_s11, %s725_s3 }
  0x40   : > { %146 = vmax.xlane.f32.xlu0 %v145_v5 }
  0x41   : > { %p734_p0 = por %p733_p10, %p732_p8 }
  0x43   : > { %p735_p2 = pnand %p734_p0, %p728_p13 }
  0xc9   : > { %v144_v6 = vpop.xlane.xlu0 %143 }
  0xca   : > { %v148_v7 = vsub.f32 %v139_v2, %v144_v6 }
  0xcc   : > { %v150_v8 = vmul.f32 1.442695, %v148_v7 }
  0xcd   : > { %v147_v9 = vpop.xlane.xlu0 %146 }
  0xce   : > { %615 = vpow2.f32 %v150_v8  ;;  %v149_v10 = vsub.f32 %v140_v3, %v147_v9 }
  0xd0   : > { %v152_v11 = vmul.f32 1.442695, %v149_v10 }
  0xd2   : > { %617 = vpow2.f32 %v152_v11 }
  0xd8   : > { %v616_v12 = vpop.eup %615 }
  0xd9   : > { %v154_v13 = vsel %vm141_vm0, %v616_v12, 0.0 }
  0xda   : > { %155 = vadd.xlane.f32.xlu1 %v154_v13 }
  0xdc   : > { %v618_v14 = vpop.eup %617 }
  0xdd   : > { %v157_v15 = vsel %vm141_vm0, %v618_v14, 0.0 }
  0xde   : > { %158 = vadd.xlane.f32.xlu1 %v157_v15 }
 0x167   : > { %v156_v16 = vpop.xlane.xlu1 %155 }
 0x168   : > { %619 = vlog2.f32 %v156_v16 }
 0x16b   : > { %v159_v17 = vpop.xlane.xlu1 %158 }
 0x16c   : > { %621 = vlog2.f32 %v159_v17 }
 0x172   : > { %v620_v18 = vpop.eup %619 }
 0x173   : > { %v161_v19 = vmul.f32 0.6931472, %v620_v18 }
 0x175   : > { %v164_v20 = vsub.f32 %v148_v7, %v161_v19 }
 0x176   : > { %v622_v21 = vpop.eup %621 }
 0x177   : > { %v166_v22 = vsel %vm141_vm0, %v164_v20, -inf  ;;  %v163_v23 = vmul.f32 0.6931472, %v622_v21 }
 0x178   : > { %v167_v24 = vrot.slane %v166_v22, 4 }
 0x179   : > { %v165_v25 = vsub.f32 %v149_v10, %v163_v23 }
 0x17a   : > { %v168_v26 = vmax.f32 %v166_v22, %v167_v24 }
 0x17b   : > { %v173_v27 = vsel %vm141_vm0, %v165_v25, -inf }
 0x17c   : > { %v169_v28 = vrot.slane %v168_v26, 2  ;;  %v174_v29 = vrot.slane %v173_v27, 4 }
 0x17e   : > { %v175_v30 = vmax.f32 %v173_v27, %v174_v29  ;;  %v170_v31 = vmax.f32 %v168_v26, %v169_v28 }
 0x180   : > { %v176_v32 = vrot.slane %v175_v30, 2  ;;  %v171_v33 = vrot.slane %v170_v31, 1 }
 0x182   : > { %v172_v34 = vmax.f32 %v170_v31, %v171_v33  ;;  %v177_v35 = vmax.f32 %v175_v30, %v176_v32 }
 0x184   : > { %v180_v36 = vsub.f32 %v164_v20, %v172_v34  ;;  %v178_v37 = vrot.slane %v177_v35, 1 }
 0x186   : > { %v182_v38 = vmul.f32 1.442695, %v180_v36  ;;  %v179_v39 = vmax.f32 %v177_v35, %v178_v37 }
 0x188   : > { %623 = vpow2.f32 %v182_v38  ;;  %v181_v40 = vsub.f32 %v165_v25, %v179_v39 }
 0x18a   : > { %v184_v41 = vmul.f32 1.442695, %v181_v40 }
 0x18c   : > { %625 = vpow2.f32 %v184_v41 }
 0x192   : > { %v624_v42 = vpop.eup %623 }
 0x193   : > { %v186_v43 = vsel %vm141_vm0, %v624_v42, 0.0 }
 0x194   : > { %v187_v44 = vrot.slane %v186_v43, 4 }
 0x196   : > { %v626_v45 = vpop.eup %625  ;;  %v188_v46 = vadd.f32 %v187_v44, %v186_v43 }
 0x197   : > { %v193_v47 = vsel %vm141_vm0, %v626_v45, 0.0 }
 0x198   : > { %v189_v48 = vrot.slane %v188_v46, 2  ;;  %v194_v49 = vrot.slane %v193_v47, 4 }
 0x19a   : > { %v190_v50 = vadd.f32 %v189_v48, %v188_v46  ;;  %v195_v51 = vadd.f32 %v194_v49, %v193_v47 }
 0x19c   : > { %v191_v52 = vrot.slane %v190_v50, 1  ;;  %v196_v53 = vrot.slane %v195_v51, 2 }
 0x19e   : > { %v192_v54 = vadd.f32 %v191_v52, %v190_v50  ;;  %v197_v55 = vadd.f32 %v196_v53, %v195_v51 }
 0x1a0   : > { %627 = vlog2.f32 %v192_v54  ;;  %v198_v56 = vrot.slane %v197_v55, 1 }
 0x1a2   : > { %v199_v57 = vadd.f32 %v198_v56, %v197_v55 }
 0x1a4   : > { %629 = vlog2.f32 %v199_v57 }
 0x1aa   : > { %v628_v58 = vpop.eup %627 }
 0x1ab   : > { %v201_v59 = vmul.f32 0.6931472, %v628_v58 }
 0x1ad   : > { %v204_v60 = vsub.f32 %v180_v36, %v201_v59 }
 0x1ae   : > { %v630_v61 = vpop.eup %629 }
 0x1af   : > { %v206_v62 = vsel %vm141_vm0, %v204_v60, -inf  ;;  %v203_v63 = vmul.f32 0.6931472, %v630_v61 }
 0x1b0   : > { %207 = vmax.xlane.f32.xlu0 %v206_v62 }
 0x1b1   : > { %v205_v0 = vsub.f32 %v181_v40, %v203_v63 }
 0x1b3   : > { %v209_v1 = vsel %vm141_vm0, %v205_v0, -inf }
 0x1b4   : > { %210 = vmax.xlane.f32.xlu1 %v209_v1 }
 0x23d   : > { %v208_v2 = vpop.xlane.xlu0 %207 }
 0x23e   : > { %v212_v3 = vsub.f32 %v204_v60, %v208_v2 }
 0x240   : > { %v214_v4 = vmul.f32 1.442695, %v212_v3 }
 0x241   : > { %v211_v5 = vpop.xlane.xlu1 %210 }
 0x242   : > { %631 = vpow2.f32 %v214_v4  ;;  %v213_v6 = vsub.f32 %v205_v0, %v211_v5 }
 0x244   : > { %v216_v7 = vmul.f32 1.442695, %v213_v6 }
 0x246   : > { %633 = vpow2.f32 %v216_v7 }
 0x24c   : > { %v632_v8 = vpop.eup %631 }
 0x24d   : > { %v218_v9 = vsel %vm141_vm0, %v632_v8, 0.0 }
 0x24e   : > { %219 = vadd.xlane.f32.xlu0 %v218_v9 }
 0x250   : > { %v634_v10 = vpop.eup %633 }
 0x251   : > { %v221_v11 = vsel %vm141_vm0, %v634_v10, 0.0 }
 0x252   : > { %222 = vadd.xlane.f32.xlu1 %v221_v11 }
 0x2db   : > { %v220_v12 = vpop.xlane.xlu0 %219 }
 0x2dc   : > { %635 = vlog2.f32 %v220_v12 }
 0x2df   : > { %v223_v13 = vpop.xlane.xlu1 %222 }
 0x2e0   : > { %637 = vlog2.f32 %v223_v13 }
 0x2e6   : > { %v636_v14 = vpop.eup %635 }
 0x2e7   : > { %v225_v15 = vmul.f32 0.6931472, %v636_v14 }
 0x2e9   : > { %v228_v16 = vsub.f32 %v212_v3, %v225_v15 }
 0x2ea   : > { %v638_v17 = vpop.eup %637 }
 0x2eb   : > { %v230_v18 = vsel %vm141_vm0, %v228_v16, -inf  ;;  %v227_v19 = vmul.f32 0.6931472, %v638_v17 }
 0x2ec   : > { %v231_v20 = vrot.slane %v230_v18, 4 }
 0x2ed   : > { %v229_v21 = vsub.f32 %v213_v6, %v227_v19 }
 0x2ee   : > { %v232_v22 = vmax.f32 %v230_v18, %v231_v20 }
 0x2ef   : > { %v237_v23 = vsel %vm141_vm0, %v229_v21, -inf }
 0x2f0   : > { %v233_v24 = vrot.slane %v232_v22, 2  ;;  %v238_v25 = vrot.slane %v237_v23, 4 }
 0x2f2   : > { %v239_v26 = vmax.f32 %v237_v23, %v238_v25  ;;  %v234_v27 = vmax.f32 %v232_v22, %v233_v24 }
 0x2f4   : > { %v240_v28 = vrot.slane %v239_v26, 2  ;;  %v235_v29 = vrot.slane %v234_v27, 1 }
 0x2f6   : > { %v236_v30 = vmax.f32 %v234_v27, %v235_v29  ;;  %v241_v31 = vmax.f32 %v239_v26, %v240_v28 }
 0x2f8   : > { %v244_v32 = vsub.f32 %v228_v16, %v236_v30  ;;  %v242_v33 = vrot.slane %v241_v31, 1 }
 0x2fa   : > { %v246_v34 = vmul.f32 1.442695, %v244_v32  ;;  %v243_v35 = vmax.f32 %v241_v31, %v242_v33 }
 0x2fc   : > { %639 = vpow2.f32 %v246_v34  ;;  %v245_v36 = vsub.f32 %v229_v21, %v243_v35 }
 0x2fe   : > { %v248_v37 = vmul.f32 1.442695, %v245_v36 }
 0x300   : > { %641 = vpow2.f32 %v248_v37 }
 0x306   : > { %v640_v38 = vpop.eup %639 }
 0x307   : > { %v250_v39 = vsel %vm141_vm0, %v640_v38, 0.0 }
 0x308   : > { %v251_v40 = vrot.slane %v250_v39, 4 }
 0x30a   : > { %v642_v41 = vpop.eup %641  ;;  %v252_v42 = vadd.f32 %v251_v40, %v250_v39 }
 0x30b   : > { %v257_v43 = vsel %vm141_vm0, %v642_v41, 0.0 }
 0x30c   : > { %v253_v44 = vrot.slane %v252_v42, 2  ;;  %v258_v45 = vrot.slane %v257_v43, 4 }
 0x30e   : > { %v254_v46 = vadd.f32 %v253_v44, %v252_v42  ;;  %v259_v47 = vadd.f32 %v258_v45, %v257_v43 }
 0x310   : > { %v255_v48 = vrot.slane %v254_v46, 1  ;;  %v260_v49 = vrot.slane %v259_v47, 2 }
 0x312   : > { %v256_v50 = vadd.f32 %v255_v48, %v254_v46  ;;  %v261_v51 = vadd.f32 %v260_v49, %v259_v47 }
 0x314   : > { %643 = vlog2.f32 %v256_v50  ;;  %v262_v52 = vrot.slane %v261_v51, 1 }
 0x316   : > { %v263_v53 = vadd.f32 %v262_v52, %v261_v51 }
 0x318   : > { %645 = vlog2.f32 %v263_v53 }
 0x31e   : > { %v644_v54 = vpop.eup %643 }
 0x31f   : > { %v265_v55 = vmul.f32 0.6931472, %v644_v54 }
 0x321   : > { %v268_v56 = vsub.f32 %v244_v32, %v265_v55 }
 0x322   : > { %v646_v57 = vpop.eup %645 }
 0x323   : > { %v270_v58 = vsel %vm141_vm0, %v268_v56, -inf  ;;  %v267_v59 = vmul.f32 0.6931472, %v646_v57 }
 0x324   : > { %271 = vmax.xlane.f32.xlu0 %v270_v58 }
 0x325   : > { %v269_v60 = vsub.f32 %v245_v36, %v267_v59 }
 0x327   : > { %v273_v61 = vsel %vm141_vm0, %v269_v60, -inf }
 0x328   : > { %274 = vmax.xlane.f32.xlu1 %v273_v61 }
 0x3b1   : > { %v272_v62 = vpop.xlane.xlu0 %271 }
 0x3b2   : > { %v276_v63 = vsub.f32 %v268_v56, %v272_v62 }
 0x3b4   : > { %v278_v0 = vmul.f32 1.442695, %v276_v63 }
 0x3b5   : > { %v275_v1 = vpop.xlane.xlu1 %274 }
 0x3b6   : > { %647 = vpow2.f32 %v278_v0  ;;  %v277_v2 = vsub.f32 %v269_v60, %v275_v1 }
 0x3b8   : > { %v280_v3 = vmul.f32 1.442695, %v277_v2 }
 0x3ba   : > { %649 = vpow2.f32 %v280_v3 }
 0x3c0   : > { %v648_v4 = vpop.eup %647 }
 0x3c1   : > { %v282_v5 = vsel %vm141_vm0, %v648_v4, 0.0 }
 0x3c2   : > { %283 = vadd.xlane.f32.xlu0 %v282_v5 }
 0x3c4   : > { %v650_v6 = vpop.eup %649 }
 0x3c5   : > { %v285_v7 = vsel %vm141_vm0, %v650_v6, 0.0 }
 0x3c6   : > { %286 = vadd.xlane.f32.xlu1 %v285_v7 }
 0x44f   : > { %v284_v8 = vpop.xlane.xlu0 %283 }
 0x450   : > { %651 = vlog2.f32 %v284_v8 }
 0x453   : > { %v287_v9 = vpop.xlane.xlu1 %286 }
 0x454   : > { %653 = vlog2.f32 %v287_v9 }
 0x45a   : > { %v652_v10 = vpop.eup %651 }
 0x45b   : > { %v289_v11 = vmul.f32 0.6931472, %v652_v10 }
 0x45d   : > { %v292_v12 = vsub.f32 %v276_v63, %v289_v11 }
 0x45e   : > { %v654_v13 = vpop.eup %653 }
 0x45f   : > { %v294_v14 = vsel %vm141_vm0, %v292_v12, -inf  ;;  %v291_v15 = vmul.f32 0.6931472, %v654_v13 }
 0x460   : > { %v295_v16 = vrot.slane %v294_v14, 4 }
 0x461   : > { %v293_v17 = vsub.f32 %v277_v2, %v291_v15 }
 0x462   : > { %v296_v18 = vmax.f32 %v294_v14, %v295_v16 }
 0x463   : > { %v301_v19 = vsel %vm141_vm0, %v293_v17, -inf }
 0x464   : > { %v297_v20 = vrot.slane %v296_v18, 2  ;;  %v302_v21 = vrot.slane %v301_v19, 4 }
 0x466   : > { %v303_v22 = vmax.f32 %v301_v19, %v302_v21  ;;  %v298_v23 = vmax.f32 %v296_v18, %v297_v20 }
 0x468   : > { %v304_v24 = vrot.slane %v303_v22, 2  ;;  %v299_v25 = vrot.slane %v298_v23, 1 }
 0x46a   : > { %v300_v26 = vmax.f32 %v298_v23, %v299_v25  ;;  %v305_v27 = vmax.f32 %v303_v22, %v304_v24 }
 0x46c   : > { %v308_v28 = vsub.f32 %v292_v12, %v300_v26  ;;  %v306_v29 = vrot.slane %v305_v27, 1 }
 0x46e   : > { %v310_v30 = vmul.f32 1.442695, %v308_v28  ;;  %v307_v31 = vmax.f32 %v305_v27, %v306_v29 }
 0x470   : > { %655 = vpow2.f32 %v310_v30  ;;  %v309_v32 = vsub.f32 %v293_v17, %v307_v31 }
 0x472   : > { %v312_v33 = vmul.f32 1.442695, %v309_v32 }
 0x474   : > { %657 = vpow2.f32 %v312_v33 }
 0x47a   : > { %v656_v34 = vpop.eup %655 }
 0x47b   : > { %v314_v35 = vsel %vm141_vm0, %v656_v34, 0.0 }
 0x47c   : > { %v315_v36 = vrot.slane %v314_v35, 4 }
 0x47e   : > { %v658_v37 = vpop.eup %657  ;;  %v316_v38 = vadd.f32 %v315_v36, %v314_v35 }
 0x47f   : > { %v321_v39 = vsel %vm141_vm0, %v658_v37, 0.0 }
 0x480   : > { %v317_v40 = vrot.slane %v316_v38, 2  ;;  %v322_v41 = vrot.slane %v321_v39, 4 }
 0x482   : > { %v318_v42 = vadd.f32 %v317_v40, %v316_v38  ;;  %v323_v43 = vadd.f32 %v322_v41, %v321_v39 }
 0x484   : > { %v319_v44 = vrot.slane %v318_v42, 1  ;;  %v324_v45 = vrot.slane %v323_v43, 2 }
 0x486   : > { %v320_v46 = vadd.f32 %v319_v44, %v318_v42  ;;  %v325_v47 = vadd.f32 %v324_v45, %v323_v43 }
 0x488   : > { %659 = vlog2.f32 %v320_v46  ;;  %v326_v48 = vrot.slane %v325_v47, 1 }
 0x48a   : > { %v327_v49 = vadd.f32 %v326_v48, %v325_v47 }
 0x48c   : > { %661 = vlog2.f32 %v327_v49 }
 0x492   : > { %v660_v50 = vpop.eup %659 }
 0x493   : > { %v329_v51 = vmul.f32 0.6931472, %v660_v50 }
 0x495   : > { %v332_v52 = vsub.f32 %v308_v28, %v329_v51 }
 0x496   : > { %v662_v53 = vpop.eup %661 }
 0x497   : > { %v334_v54 = vsel %vm141_vm0, %v332_v52, -inf  ;;  %v331_v55 = vmul.f32 0.6931472, %v662_v53 }
 0x498   : > { %335 = vmax.xlane.f32.xlu0 %v334_v54 }
 0x499   : > { %v333_v56 = vsub.f32 %v309_v32, %v331_v55 }
 0x49b   : > { %v337_v57 = vsel %vm141_vm0, %v333_v56, -inf }
 0x49c   : > { %338 = vmax.xlane.f32.xlu1 %v337_v57 }
 0x525   : > { %v336_v58 = vpop.xlane.xlu0 %335 }
 0x526   : > { %v340_v59 = vsub.f32 %v332_v52, %v336_v58 }
 0x528   : > { %v342_v60 = vmul.f32 1.442695, %v340_v59 }
 0x529   : > { %v339_v61 = vpop.xlane.xlu1 %338 }
 0x52a   : > { %663 = vpow2.f32 %v342_v60  ;;  %v341_v62 = vsub.f32 %v333_v56, %v339_v61 }
 0x52c   : > { %v344_v63 = vmul.f32 1.442695, %v341_v62 }
 0x52e   : > { %665 = vpow2.f32 %v344_v63 }
 0x534   : > { %v664_v0 = vpop.eup %663 }
 0x535   : > { %v346_v1 = vsel %vm141_vm0, %v664_v0, 0.0 }
 0x536   : > { %347 = vadd.xlane.f32.xlu0 %v346_v1 }
 0x538   : > { %v666_v2 = vpop.eup %665 }
 0x539   : > { %v349_v3 = vsel %vm141_vm0, %v666_v2, 0.0 }
 0x53a   : > { %350 = vadd.xlane.f32.xlu1 %v349_v3 }
 0x5c3   : > { %v348_v4 = vpop.xlane.xlu0 %347 }
 0x5c4   : > { %667 = vlog2.f32 %v348_v4 }
 0x5c7   : > { %v351_v5 = vpop.xlane.xlu1 %350 }
 0x5c8   : > { %669 = vlog2.f32 %v351_v5 }
 0x5ce   : > { %v668_v6 = vpop.eup %667 }
 0x5cf   : > { %v353_v7 = vmul.f32 0.6931472, %v668_v6 }
 0x5d1   : > { %v356_v8 = vsub.f32 %v340_v59, %v353_v7 }
 0x5d2   : > { %v670_v9 = vpop.eup %669 }
 0x5d3   : > { %v358_v10 = vsel %vm141_vm0, %v356_v8, -inf  ;;  %v355_v11 = vmul.f32 0.6931472, %v670_v9 }
 0x5d4   : > { %v359_v12 = vrot.slane %v358_v10, 4 }
 0x5d5   : > { %v357_v13 = vsub.f32 %v341_v62, %v355_v11 }
 0x5d6   : > { %v360_v14 = vmax.f32 %v358_v10, %v359_v12 }
 0x5d7   : > { %v365_v15 = vsel %vm141_vm0, %v357_v13, -inf }
 0x5d8   : > { %v361_v16 = vrot.slane %v360_v14, 2  ;;  %v366_v17 = vrot.slane %v365_v15, 4 }
 0x5da   : > { %v367_v18 = vmax.f32 %v365_v15, %v366_v17  ;;  %v362_v19 = vmax.f32 %v360_v14, %v361_v16 }
 0x5dc   : > { %v368_v20 = vrot.slane %v367_v18, 2  ;;  %v363_v21 = vrot.slane %v362_v19, 1 }
 0x5de   : > { %v364_v22 = vmax.f32 %v362_v19, %v363_v21  ;;  %v369_v23 = vmax.f32 %v367_v18, %v368_v20 }
 0x5e0   : > { %v372_v24 = vsub.f32 %v356_v8, %v364_v22  ;;  %v370_v25 = vrot.slane %v369_v23, 1 }
 0x5e2   : > { %v374_v26 = vmul.f32 1.442695, %v372_v24  ;;  %v371_v27 = vmax.f32 %v369_v23, %v370_v25 }
 0x5e4   : > { %671 = vpow2.f32 %v374_v26  ;;  %v373_v28 = vsub.f32 %v357_v13, %v371_v27 }
 0x5e6   : > { %v376_v29 = vmul.f32 1.442695, %v373_v28 }
 0x5e8   : > { %673 = vpow2.f32 %v376_v29 }
 0x5ee   : > { %v672_v30 = vpop.eup %671 }
 0x5ef   : > { %v378_v31 = vsel %vm141_vm0, %v672_v30, 0.0 }
 0x5f0   : > { %v379_v32 = vrot.slane %v378_v31, 4 }
 0x5f2   : > { %v674_v33 = vpop.eup %673  ;;  %v380_v34 = vadd.f32 %v379_v32, %v378_v31 }
 0x5f3   : > { %v385_v35 = vsel %vm141_vm0, %v674_v33, 0.0 }
 0x5f4   : > { %v381_v36 = vrot.slane %v380_v34, 2  ;;  %v386_v37 = vrot.slane %v385_v35, 4 }
 0x5f6   : > { %v382_v38 = vadd.f32 %v381_v36, %v380_v34  ;;  %v387_v39 = vadd.f32 %v386_v37, %v385_v35 }
 0x5f8   : > { %v383_v40 = vrot.slane %v382_v38, 1  ;;  %v388_v41 = vrot.slane %v387_v39, 2 }
 0x5fa   : > { %v384_v42 = vadd.f32 %v383_v40, %v382_v38  ;;  %v389_v43 = vadd.f32 %v388_v41, %v387_v39 }
 0x5fc   : > { %675 = vlog2.f32 %v384_v42  ;;  %v390_v44 = vrot.slane %v389_v43, 1 }
 0x5fe   : > { %v391_v45 = vadd.f32 %v390_v44, %v389_v43 }
 0x600   : > { %677 = vlog2.f32 %v391_v45 }
 0x606   : > { %v676_v46 = vpop.eup %675 }
 0x607   : > { %v393_v47 = vmul.f32 0.6931472, %v676_v46 }
 0x609   : > { %v396_v48 = vsub.f32 %v372_v24, %v393_v47 }
 0x60a   : > { %v678_v49 = vpop.eup %677 }
 0x60b   : > { %v398_v50 = vsel %vm141_vm0, %v396_v48, -inf  ;;  %v395_v51 = vmul.f32 0.6931472, %v678_v49 }
 0x60c   : > { %399 = vmax.xlane.f32.xlu0 %v398_v50 }
 0x60d   : > { %v397_v52 = vsub.f32 %v373_v28, %v395_v51 }
 0x60f   : > { %v401_v53 = vsel %vm141_vm0, %v397_v52, -inf }
 0x610   : > { %402 = vmax.xlane.f32.xlu1 %v401_v53 }
 0x699   : > { %v400_v54 = vpop.xlane.xlu0 %399 }
 0x69a   : > { %v404_v55 = vsub.f32 %v396_v48, %v400_v54 }
 0x69c   : > { %v406_v56 = vmul.f32 1.442695, %v404_v55 }
 0x69d   : > { %v403_v57 = vpop.xlane.xlu1 %402 }
 0x69e   : > { %679 = vpow2.f32 %v406_v56  ;;  %v405_v58 = vsub.f32 %v397_v52, %v403_v57 }
 0x6a0   : > { %v408_v59 = vmul.f32 1.442695, %v405_v58 }
 0x6a2   : > { %681 = vpow2.f32 %v408_v59 }
 0x6a8   : > { %v680_v60 = vpop.eup %679 }
 0x6a9   : > { %v410_v61 = vsel %vm141_vm0, %v680_v60, 0.0 }
 0x6aa   : > { %411 = vadd.xlane.f32.xlu0 %v410_v61 }
 0x6ac   : > { %v682_v62 = vpop.eup %681 }
 0x6ad   : > { %v413_v63 = vsel %vm141_vm0, %v682_v62, 0.0 }
 0x6ae   : > { %414 = vadd.xlane.f32.xlu1 %v413_v63 }
 0x737   : > { %v412_v0 = vpop.xlane.xlu0 %411 }
 0x738   : > { %683 = vlog2.f32 %v412_v0 }
 0x73b   : > { %v415_v1 = vpop.xlane.xlu1 %414 }
 0x73c   : > { %685 = vlog2.f32 %v415_v1 }
 0x742   : > { %v684_v2 = vpop.eup %683 }
 0x743   : > { %v417_v3 = vmul.f32 0.6931472, %v684_v2 }
 0x745   : > { %v420_v4 = vsub.f32 %v404_v55, %v417_v3 }
 0x746   : > { %v686_v5 = vpop.eup %685 }
 0x747   : > { %v422_v6 = vsel %vm141_vm0, %v420_v4, -inf  ;;  %v419_v7 = vmul.f32 0.6931472, %v686_v5 }
 0x748   : > { %v423_v8 = vrot.slane %v422_v6, 4 }
 0x749   : > { %v421_v9 = vsub.f32 %v405_v58, %v419_v7 }
 0x74a   : > { %v424_v10 = vmax.f32 %v422_v6, %v423_v8 }
 0x74b   : > { %v429_v11 = vsel %vm141_vm0, %v421_v9, -inf }
 0x74c   : > { %v425_v12 = vrot.slane %v424_v10, 2  ;;  %v430_v13 = vrot.slane %v429_v11, 4 }
 0x74e   : > { %v426_v14 = vmax.f32 %v424_v10, %v425_v12  ;;  %v431_v15 = vmax.f32 %v429_v11, %v430_v13 }
 0x750   : > { %v427_v16 = vrot.slane %v426_v14, 1  ;;  %v432_v17 = vrot.slane %v431_v15, 2 }
 0x752   : > { %v428_v18 = vmax.f32 %v426_v14, %v427_v16  ;;  %v433_v19 = vmax.f32 %v431_v15, %v432_v17 }
 0x754   : > { %v436_v20 = vsub.f32 %v420_v4, %v428_v18  ;;  %v434_v21 = vrot.slane %v433_v19, 1 }
 0x756   : > { %v438_v22 = vmul.f32 1.442695, %v436_v20  ;;  %v435_v23 = vmax.f32 %v433_v19, %v434_v21 }
 0x758   : > { %687 = vpow2.f32 %v438_v22  ;;  %v437_v24 = vsub.f32 %v421_v9, %v435_v23 }
 0x75a   : > { %v440_v25 = vmul.f32 1.442695, %v437_v24 }
 0x75c   : > { %689 = vpow2.f32 %v440_v25 }
 0x762   : > { %v688_v26 = vpop.eup %687 }
 0x763   : > { %v442_v27 = vsel %vm141_vm0, %v688_v26, 0.0 }
 0x764   : > { %v443_v28 = vrot.slane %v442_v27, 4 }
 0x766   : > { %v690_v29 = vpop.eup %689  ;;  %v444_v30 = vadd.f32 %v443_v28, %v442_v27 }
 0x767   : > { %v449_v31 = vsel %vm141_vm0, %v690_v29, 0.0 }
 0x768   : > { %v445_v32 = vrot.slane %v444_v30, 2  ;;  %v450_v33 = vrot.slane %v449_v31, 4 }
 0x76a   : > { %v446_v34 = vadd.f32 %v445_v32, %v444_v30  ;;  %v451_v35 = vadd.f32 %v450_v33, %v449_v31 }
 0x76c   : > { %v447_v36 = vrot.slane %v446_v34, 1  ;;  %v452_v37 = vrot.slane %v451_v35, 2 }
 0x76e   : > { %v448_v38 = vadd.f32 %v447_v36, %v446_v34  ;;  %v453_v39 = vadd.f32 %v452_v37, %v451_v35 }
 0x770   : > { %691 = vrcp.f32 %v448_v38  ;;  %v454_v40 = vrot.slane %v453_v39, 1 }
 0x772   : > { %v455_v41 = vadd.f32 %v454_v40, %v453_v39 }
 0x774   : > { %693 = vrcp.f32 %v455_v41 }
 0x77a   : > { %v692_v42 = vpop.eup %691 }
 0x77b   : > { %v458_v43 = vmul.f32 %v692_v42, %v688_v26 }
 0x77d   : > { %460 = vst.msk [vmem:[%s134_s25] sm:$0xff] %vm141_vm0, %v458_v43 }
 0x77e   : > { %v694_v44 = vpop.eup %693 }
 0x77f   : > { %v459_v45 = vmul.f32 %v694_v44, %v690_v29 }
 0x781   : > { %461 = vst.msk [vmem:[%s134_s25 + $0x8] sm:$0xff] %vm141_vm0, %v459_v45 }
 0x782   : > { %738 = shalt.err (!%p735_p2)
}
 0x783   : > { %s739_s13 = scalar_lea.hbm %s970_s2, 256  ;;  %s743_s20 = scalar_lea.hbm %s1018_s1, 512 }
 0x784   : > { %p740_p4 = scmp.ne.s32.totalorder %s970_s2, %s739_s13  ;;  %p744_p9 = scmp.lt.u32.totalorder %s970_s2, %s1018_s1 }
 0x785   : > { %p745_p1 = scmp.lt.u32.totalorder %s743_s20, %s739_s13  ;;  %p747_p6 = scmp.lt.u32.totalorder %s739_s13, %s970_s2 }
 0x786   : > { %p741_p5 = pnand %p740_p4, %p1025_p11 }
 0x787   : > { %p746_p3 = por %p745_p1, %p744_p9 }
 0x788   : > { %p742_p7 = pneg %p741_p5 }
 0x789   : > { %p748_p12 = por %p747_p6, %p746_p3 }
 0x78b   : > { %p749_p13 = pnand %p748_p12, %p742_p7 }
 0x78d   : > { %752 = shalt.err (!%p749_p13)
}
 0x78e   : > { %s797_s24 = smov 128   ;;  %s798_s26 = smov 8  }
 0x78f   : > { %567 = dma.vmem_to_hbm [thread:$0]  (%p1025_p11), %s972_s27, 256, %s970_s2, %s463_s10, %s797_s24, %s797_s24, %s798_s26  }
 0x790 PF: > { %s491_s30 = sand.u32 1, %s779_s6   ;;  %p1026_p8 = scmp.ne.s32.totalorder %s1023_s19, 0 }
 0x791   : > { %p1027_p10 = scmp.ge.s32.totalorder %s791_s9, 2  ;;  %s492_s17 = scalar_lea.sflag [#allocation4], %s491_s30 }
 0x793   : > { %p574_p0 = pnand %p1027_p10, %p1026_p8 }
 0x795   : > { %774 = dma.done.wait (!%p574_p0), %s492_s17, 256  }
 0x796   : > { %776 = vsyncadd (!%p574_p0), %s492_s17, 4294967040  ;;  %p14_p2 = scmp.ge.s32.totalorder %s834_s12, 4   ;;  %s1028_s6 = smov %s783_s7 }
 0x797   : > { %s1029_s7 = smov %s787_s8  ;;  %s1030_s8 = smov %s846_s15 }
 0x798   : > { %s1031_s9 = smov %s834_s12  ;;  %16 = sbr.rel (!%p14_p2) target bundleno = 5 (0x5), region = 69 }
 0x79f   :  { %497 = vsyncpa [#allocation3], 1 }
 0x7a0   :  { %499 = vsyncpa [#allocation3 + $0x1], 1 }
 0x7a1   :  { %500 = vsyncpa [#allocation4], 1 }
 0x7a2   :  { %502 = vsyncpa [#allocation4 + $0x1], 1 }

</bundles_post_ra>
